<compile_context>
chip_gen: v7x
topology: tpu7x:2x2x1
jax: 0.10.0
libtpu: 0.0.40
codegen_flags: <defaults>
</compile_context>

<pallas_src>
import math

import jax
import jax.numpy as jnp
from jax.experimental import pallas as pl
from jax.experimental.pallas import tpu as pltpu

HIDDEN = 128   # fixed by the module definition
OUT = 1
LANE = 128
SUBLANE = 8


def _round_up(n, m):
    return ((n + m - 1) // m) * m


def _discriminator_kernel(x_ref, w1_ref, b1_ref, w2_ref, b2_ref, o_ref):
    # ---- Linear(img_dim -> 128): bf16 MXU matmul, f32 accumulation ----
    h = jnp.dot(x_ref[...], w1_ref[...], preferred_element_type=jnp.float32)
    h = h + b1_ref[...]                       # (TB, 128) + (1, 128) broadcast
    # ---- LeakyReLU(negative_slope=0.1) on the VPU (f32) ----
    h = jnp.where(h > 0, h, 0.1 * h)
    # ---- Linear(128 -> 1): N=1 matmul done as VPU multiply + lane reduction ----
    y = jnp.sum(h * w2_ref[...], axis=-1, keepdims=True) + b2_ref[...]
    # ---- Sigmoid: exp on EUP, approx reciprocal also on EUP (free slot) ----
    o_ref[...] = pl.reciprocal(1.0 + jnp.exp(-y), approx=True).astype(o_ref.dtype)


def discriminator_forward(x, w1, b1, w2, b2, *, batch_tile=1024):
    """x: (B, img_dim) f32. Returns (B, 1) f32 == sigmoid(lrelu(x@W1+b1)@W2+b2).

    batch_tile is capped at 1024 rows (bf16 x tile ~1.75 MiB at img_dim=896), so
    2x double-buffered x blocks + ~0.4 MiB of resident weights fit comfortably
    inside the default scoped-VMEM on v5e/v6e and v7x (64 MiB physical).
    """
    B, D = x.shape
    assert w1.shape == (D, HIDDEN)
    assert w2.shape == (HIDDEN, OUT)

    # Pad the feature dim to a lane multiple (e.g. 784 -> 896) so x rows and
    # w1 columns occupy fully dense vregs and the MXU K-tiling is clean.
    Dp = _round_up(D, LANE)
    if Dp != D:
        x = jnp.pad(x, ((0, 0), (0, Dp - D)))
        w1 = jnp.pad(w1, ((0, Dp - D), (0, 0)))

    # Batch tile: multiple of the sublane count; pad B up to a tile multiple.
    TB = min(_round_up(batch_tile, SUBLANE), _round_up(B, SUBLANE))
    Bp = _round_up(B, TB)
    if Bp != B:
        x = jnp.pad(x, ((0, Bp - B), (0, 0)))

    # bf16 matmul operands; biases / second-layer weights stay f32.
    x_bf16 = x.astype(jnp.bfloat16)
    w1_bf16 = w1.astype(jnp.bfloat16)
    b1_2d = b1.reshape(1, HIDDEN).astype(jnp.float32)
    w2_row = w2.reshape(1, HIDDEN).astype(jnp.float32)   # (128, 1) column -> (1, 128) row
    b2_2d = b2.reshape(1, OUT).astype(jnp.float32)

    num_blocks = Bp // TB
    cost = pl.CostEstimate(
        flops=2 * Bp * Dp * HIDDEN + 4 * Bp * HIDDEN,
        transcendentals=2 * Bp,                 # exp + approx reciprocal per row
        bytes_accessed=(x_bf16.size * 2 + w1_bf16.size * 2
                        + (b1_2d.size + w2_row.size + b2_2d.size) * 4
                        + Bp * OUT * 4),
    )

    out = pl.pallas_call(
        _discriminator_kernel,
        out_shape=jax.ShapeDtypeStruct((Bp, OUT), jnp.float32),
        grid_spec=pltpu.PrefetchScalarGridSpec(
            num_scalar_prefetch=0,
            grid=(num_blocks,),
            in_specs=[
                pl.BlockSpec((TB, Dp), lambda i: (i, 0)),       # x tile (streamed)
                pl.BlockSpec((Dp, HIDDEN), lambda i: (0, 0)),   # w1 (VMEM-resident)
                pl.BlockSpec((1, HIDDEN), lambda i: (0, 0)),    # b1
                pl.BlockSpec((1, HIDDEN), lambda i: (0, 0)),    # w2 as a row
                pl.BlockSpec((1, OUT), lambda i: (0, 0)),       # b2
            ],
            out_specs=pl.BlockSpec((TB, OUT), lambda i: (i, 0)),
        ),
        compiler_params=pltpu.CompilerParams(
            dimension_semantics=("parallel",),  # batch tiles are independent (v7x 2 TCs)
        ),
        cost_estimate=cost,
    )(x_bf16, w1_bf16, b1_2d, w2_row, b2_2d)

    return out[:B]


def init_params(key, img_dim):
    """Deterministic PyTorch-style init: U(-1/sqrt(fan_in), 1/sqrt(fan_in))."""
    k1, k2, k3, k4 = jax.random.split(key, 4)
    bound1 = 1.0 / math.sqrt(img_dim)
    bound2 = 1.0 / math.sqrt(HIDDEN)
    w1 = jax.random.uniform(k1, (img_dim, HIDDEN), jnp.float32, -bound1, bound1)
    b1 = jax.random.uniform(k2, (HIDDEN,), jnp.float32, -bound1, bound1)
    w2 = jax.random.uniform(k3, (HIDDEN, OUT), jnp.float32, -bound2, bound2)
    b2 = jax.random.uniform(k4, (OUT,), jnp.float32, -bound2, bound2)
    return w1, b1, w2, b2


if __name__ == "__main__":
    key = jax.random.PRNGKey(0)
    k_x, k_p = jax.random.split(key)

    B, IMG_DIM = 8, 784  # MNIST-flattened images, small batch for the smoke test
    x = jax.random.normal(k_x, (B, IMG_DIM), jnp.float32)
    w1, b1, w2, b2 = init_params(k_p, IMG_DIM)

    out = discriminator_forward(x, w1, b1, w2, b2)
    out = jax.block_until_ready(out)
    assert out.shape == (B, 1)

    # Reference with the same bf16-matmul / f32-accumulate numerics.
    h_ref = jnp.dot(x.astype(jnp.bfloat16), w1.astype(jnp.bfloat16),
                    preferred_element_type=jnp.float32) + b1
    h_ref = jnp.where(h_ref > 0, h_ref, 0.1 * h_ref)
    y_ref = jax.nn.sigmoid(h_ref @ w2 + b2)
    assert jnp.allclose(out, y_ref, atol=2e-3, rtol=2e-3), (
        float(jnp.max(jnp.abs(out - y_ref))))

    print("KERNEL_OK")
</pallas_src>

<mosaic_0001>
module attributes {stable_mosaic.version = 11 : i64} {
  func.func @_discriminator_kernel(%arg0: i32, %arg1: memref<8x896xbf16, #tpu.memory_space<vmem>>, %arg2: memref<896x128xbf16, #tpu.memory_space<vmem>>, %arg3: memref<1x128xf32, #tpu.memory_space<vmem>>, %arg4: memref<1x128xf32, #tpu.memory_space<vmem>>, %arg5: memref<1x1xf32, #tpu.memory_space<vmem>>, %arg6: memref<8x1xf32, #tpu.memory_space<vmem>>) attributes {dimension_semantics = [#tpu.dimension_semantics<parallel>], iteration_bounds = array<i64: 1>, scalar_prefetch = 0 : i64, scratch_operands = 0 : i64, tpu.core_type = #tpu.core_type<tc>, window_params = [{transform_indices = @transform_0, window_bounds = array<i64: 8, 896>}, {pipeline_mode = #tpu.pipeline_mode<synchronous>, transform_indices = @transform_1, window_bounds = array<i64: 896, 128>}, {pipeline_mode = #tpu.pipeline_mode<synchronous>, transform_indices = @transform_2, window_bounds = array<i64: 1, 128>}, {pipeline_mode = #tpu.pipeline_mode<synchronous>, transform_indices = @transform_3, window_bounds = array<i64: 1, 128>}, {pipeline_mode = #tpu.pipeline_mode<synchronous>, transform_indices = @transform_4, window_bounds = array<i64: 1, 1>}, {transform_indices = @transform_5, window_bounds = array<i64: 8, 1>}]} {
    %c0 = arith.constant 0 : index
    %c0_0 = arith.constant 0 : index
    %0 = vector.load %arg1[%c0, %c0_0] : memref<8x896xbf16, #tpu.memory_space<vmem>>, vector<8x896xbf16>
    %c0_1 = arith.constant 0 : index
    %c0_2 = arith.constant 0 : index
    %1 = vector.load %arg2[%c0_1, %c0_2] : memref<896x128xbf16, #tpu.memory_space<vmem>>, vector<896x128xbf16>
    %cst = arith.constant dense<0.000000e+00> : vector<8x128xf32>
    %2 = tpu.matmul %0, %1, %cst {dimension_numbers = #tpu.dot_dimension_numbers<[1], [0], [0], [1], [0, 0, 1, 1], [], []>} : vector<8x896xbf16>, vector<896x128xbf16>, vector<8x128xf32> -> vector<8x128xf32>
    %c0_3 = arith.constant 0 : index
    %c0_4 = arith.constant 0 : index
    %3 = vector.load %arg3[%c0_3, %c0_4] : memref<1x128xf32, #tpu.memory_space<vmem>>, vector<1x128xf32>
    %4 = vector.broadcast %3 : vector<1x128xf32> to vector<8x128xf32>
    %5 = arith.addf %2, %4 : vector<8x128xf32>
    %cst_5 = arith.constant 0.000000e+00 : f32
    %6 = vector.broadcast %cst_5 : f32 to vector<8x128xf32>
    %7 = arith.cmpf ogt, %5, %6 : vector<8x128xf32>
    %cst_6 = arith.constant 1.000000e-01 : f32
    %8 = vector.broadcast %cst_6 : f32 to vector<8x128xf32>
    %9 = arith.mulf %8, %5 : vector<8x128xf32>
    %10 = arith.select %7, %5, %9 : vector<8x128xi1>, vector<8x128xf32>
    %c0_7 = arith.constant 0 : index
    %c0_8 = arith.constant 0 : index
    %11 = vector.load %arg4[%c0_7, %c0_8] : memref<1x128xf32, #tpu.memory_space<vmem>>, vector<1x128xf32>
    %12 = vector.broadcast %11 : vector<1x128xf32> to vector<8x128xf32>
    %13 = arith.mulf %10, %12 : vector<8x128xf32>
    %cst_9 = arith.constant dense<0.000000e+00> : vector<8xf32>
    %14 = vector.multi_reduction <add>, %13, %cst_9 [1] : vector<8x128xf32> to vector<8xf32>
    %15 = vector.shape_cast %14 : vector<8xf32> to vector<8x1xf32>
    %c0_10 = arith.constant 0 : index
    %c0_11 = arith.constant 0 : index
    %16 = vector.load %arg5[%c0_10, %c0_11] : memref<1x1xf32, #tpu.memory_space<vmem>>, vector<1x1xf32>
    %17 = vector.broadcast %16 : vector<1x1xf32> to vector<8x1xf32>
    %18 = arith.addf %15, %17 : vector<8x1xf32>
    %cst_12 = arith.constant 0.000000e+00 : f32
    %19 = vector.broadcast %cst_12 : f32 to vector<8x1xf32>
    %20 = arith.subf %19, %18 : vector<8x1xf32>
    %21 = math.exp %20 : vector<8x1xf32>
    %cst_13 = arith.constant 1.000000e+00 : f32
    %22 = vector.broadcast %cst_13 : f32 to vector<8x1xf32>
    %23 = arith.addf %22, %21 : vector<8x1xf32>
    %24 = tpu.reciprocal %23 {approx = true} : vector<8x1xf32> -> vector<8x1xf32>
    %c0_14 = arith.constant 0 : index
    %c0_15 = arith.constant 0 : index
    %25 = vector.load %arg6[%c0_14, %c0_15] : memref<8x1xf32, #tpu.memory_space<vmem>>, vector<8x1xf32>
    tpu.vector_store %arg6[%c0_14, %c0_15], %24 {strides = array<i32>} : memref<8x1xf32, #tpu.memory_space<vmem>>, vector<8x1xf32>,
    return
  }
  func.func @transform_0(%arg0: i32) -> (i32, i32) {
    %c0_i32 = arith.constant 0 : i32
    %c0_i32_0 = arith.constant 0 : i32
    return %arg0, %c0_i32 : i32, i32
  }
  func.func @transform_1(%arg0: i32) -> (i32, i32) {
    %c0_i32 = arith.constant 0 : i32
    %c0_i32_0 = arith.constant 0 : i32
    %c0_i32_1 = arith.constant 0 : i32
    return %c0_i32, %c0_i32_0 : i32, i32
  }
  func.func @transform_2(%arg0: i32) -> (i32, i32) {
    %c0_i32 = arith.constant 0 : i32
    %c0_i32_0 = arith.constant 0 : i32
    %c0_i32_1 = arith.constant 0 : i32
    return %c0_i32, %c0_i32_0 : i32, i32
  }
  func.func @transform_3(%arg0: i32) -> (i32, i32) {
    %c0_i32 = arith.constant 0 : i32
    %c0_i32_0 = arith.constant 0 : i32
    %c0_i32_1 = arith.constant 0 : i32
    return %c0_i32, %c0_i32_0 : i32, i32
  }
  func.func @transform_4(%arg0: i32) -> (i32, i32) {
    %c0_i32 = arith.constant 0 : i32
    %c0_i32_0 = arith.constant 0 : i32
    %c0_i32_1 = arith.constant 0 : i32
    return %c0_i32, %c0_i32_0 : i32, i32
  }
  func.func @transform_5(%arg0: i32) -> (i32, i32) {
    %c0_i32 = arith.constant 0 : i32
    %c0_i32_0 = arith.constant 0 : i32
    return %arg0, %c0_i32 : i32, i32
  }
}

</mosaic_0001>

<bundles_post_ra>
// kernel: tpu_custom_call.1
= control target key start
LH: loop header
LB: loop body
LE: loop exit
PB: predicated region body
PF: predicated region fallthrough
CT: control target
= control target key end

     0   :  { %s1088_s0 = inlined_call_operand.hbm [shape: bf16[8,896], index: 0, kind: input, shape index: {}]   ;;  %s1089_s1 = inlined_call_operand.hbm [shape: bf16[896,128], index: 1, kind: input, shape index: {}]   ;;  %s1090_s2 = inlined_call_operand.vmem [shape: f32[1,128], index: 2, kind: input, shape index: {}]   ;;  %s1091_s3 = inlined_call_operand.vmem [shape: f32[1,128], index: 3, kind: input, shape index: {}]   ;;  %s1092_s4 = inlined_call_operand.<no memory space> [shape: f32[1,1], index: 4, kind: input, shape index: {}]   ;;  %s1093_s5 = inlined_call_operand.vmem [shape: f32[8,1], index: 5, kind: output, shape index: {}]  }
   0x1   :  { %v10_v0 = vstv %s1092_s4 }
   0x2   :  { %11 = vst [vmem:[#allocation2] sm:$0x1] %v10_v0 }
   0x3   :  { %12 = vsyncpa [#allocation4], 0 }
   0x4   :  { %13 = vsyncpa [#allocation6], 0  ;;  %s1009_s20 = smov [#allocation3]   ;;  %s1010_s22 = smov [#allocation5]  }
   0x5   :  { %s20_s21 = sshll.u32 %s1009_s20, 4  ;;  %s29_s23 = sshll.u32 %s1010_s22, 4  ;;  %s21_s21 = int_to_ptr.vmem [resolvable:$true] %s20_s21  ;;  %s1048_s23 = int_to_ptr.vmem [resolvable:$true] %s29_s23 }
   0x6   :  { %s961_s26 = scalar_lea.hbm %s1088_s0, 448 }
   0x7   :  { %p962_p0 = scmp.ne.s32.totalorder %s1088_s0, %s961_s26  ;;  %p965_p1 = scmp.lt.u32.totalorder %s961_s26, %s1088_s0 }
   0x9   :  { %p967_p2 = pnand %p965_p1, %p962_p0 }
   0xb   :  { %970 = shalt.err (!%p967_p2)
}
   0xc   :  { %s971_s30 = scalar_lea.vmem %s21_s21, 448  ;;  %p976_p4 = scmp.lt.s32.totalorder %s21_s21, %s21_s21 }
   0xd   :  { %p972_p3 = scmp.ne.s32.totalorder %s21_s21, %s971_s30  ;;  %p977_p5 = scmp.lt.s32.totalorder %s971_s30, %s971_s30 }
   0xf   :  { %p978_p6 = por %p977_p5, %p976_p4 }
  0x11   :  { %p979_p7 = pnand %p978_p6, %p972_p3 }
  0x13   :  { %982 = shalt.err (!%p979_p7)
}
  0x14   :  { %23 = dma.hbm_to_vmem [thread:$0]  %s1088_s0, 448, %s21_s21, [#allocation4]  }
  0x15   :  { %s983_s10 = scalar_lea.hbm %s1089_s1, 7168 }
  0x16   :  { %p984_p8 = scmp.ne.s32.totalorder %s1089_s1, %s983_s10  ;;  %p987_p9 = scmp.lt.u32.totalorder %s983_s10, %s1089_s1 }
  0x18   :  { %p989_p10 = pnand %p987_p9, %p984_p8 }
  0x1a   :  { %992 = shalt.err (!%p989_p10)
}
  0x1b   :  { %s993_s15 = scalar_lea.vmem %s1048_s23, 7168  ;;  %p998_p12 = scmp.lt.s32.totalorder %s1048_s23, %s1048_s23 }
  0x1c   :  { %p994_p11 = scmp.ne.s32.totalorder %s1048_s23, %s993_s15  ;;  %p999_p13 = scmp.lt.s32.totalorder %s993_s15, %s993_s15 }
  0x1e   :  { %p1000_p0 = por %p999_p13, %p998_p12 }
  0x20   :  { %p1001_p1 = pnand %p1000_p0, %p994_p11 }
  0x22   :  { %1004 = shalt.err (!%p1001_p1)
}
  0x23   :  { %s1011_s0 = smov 64   ;;  %s1012_s16 = smov 4  }
  0x24   :  { %35 = dma.hbm_to_vmem [thread:$0]  %s1089_s1, 7168, %s1048_s23, [#allocation6], %s1011_s0, %s1011_s0, %s1012_s16  }
  0x25   :  { %1005 = dma.done.wait [#allocation4], 448  }
  0x26   :  { %1006 = vsyncadd [#allocation4], 4294966848 }
  0x27   :  { %1007 = dma.done.wait [#allocation6], 7168  }
  0x28   :  { %1008 = vsyncadd [#allocation6], 4294960128  ;;  %v894_v1 = vld [vmem:[#allocation5 + $0x40] sm:$0xff]   ;;  %v898_v5 = vld [vmem:[#allocation5 + $0x48] sm:$0xff]   ;;  %v1013_v43 = vmov 0.0   ;;  %vm1014_vm0 = vmmov 0  }
  0x29   :  { %v895_v2 = vld [vmem:[#allocation5] sm:$0xff]   ;;  %793 = vmatprep.subr.bf16.mxu0 %v894_v1  ;;  %v899_v6 = vld [vmem:[#allocation5 + $0x8] sm:$0xff]   ;;  %v902_v9 = vld [vmem:[#allocation5 + $0x50] sm:$0xff]   ;;  %vm719_vm2 = vcmask 7168  }
  0x2a   :  { %v896_v3 = vld [vmem:[#allocation5 + $0xc0] sm:$0xff]   ;;  %794 = vmatpush3.bf16.msra.mxu0 %v895_v2  ;;  %v900_v7 = vld [vmem:[#allocation5 + $0xc8] sm:$0xff]   ;;  %v903_v10 = vld [vmem:[#allocation5 + $0x10] sm:$0xff]  }
  0x2b   :  { %v897_v4 = vld [vmem:[#allocation5 + $0x80] sm:$0xff]   ;;  %815 = vmatprep.subr.bf16.mxu1 %v896_v3  ;;  %795 = vmatprep.subr.bf16.mxu0 %v898_v5  ;;  %v901_v8 = vld [vmem:[#allocation5 + $0x88] sm:$0xff]   ;;  %v904_v11 = vld [vmem:[#allocation5 + $0xd0] sm:$0xff]  }
  0x2c   :  { %816 = vmatpush3.bf16.msra.mxu1 %v897_v4  ;;  %v905_v12 = vld [vmem:[#allocation5 + $0x90] sm:$0xff]   ;;  %v906_v13 = vld [vmem:[#allocation5 + $0x58] sm:$0xff]   ;;  %v910_v17 = vld [vmem:[#allocation5 + $0x60] sm:$0xff]  }
  0x2d   :  { %817 = vmatprep.subr.bf16.mxu1 %v900_v7  ;;  %v907_v14 = vld [vmem:[#allocation5 + $0x18] sm:$0xff]   ;;  %v911_v18 = vld [vmem:[#allocation5 + $0x20] sm:$0xff]   ;;  %v914_v21 = vld [vmem:[#allocation5 + $0x68] sm:$0xff]  }
  0x2e   :  { %796 = vmatpush3.bf16.msra.mxu0 %v899_v6  ;;  %v908_v15 = vld [vmem:[#allocation5 + $0xd8] sm:$0xff]   ;;  %v912_v19 = vld [vmem:[#allocation5 + $0xe0] sm:$0xff]   ;;  %v915_v22 = vld [vmem:[#allocation5 + $0x28] sm:$0xff]  }
  0x2f   :  { %797 = vmatprep.subr.bf16.mxu0 %v902_v9  ;;  %v909_v16 = vld [vmem:[#allocation5 + $0x98] sm:$0xff]   ;;  %v913_v20 = vld [vmem:[#allocation5 + $0xa0] sm:$0xff]   ;;  %v916_v23 = vld [vmem:[#allocation5 + $0xe8] sm:$0xff]  }
  0x30   :  { %818 = vmatpush3.bf16.msra.mxu1 %v901_v8  ;;  %v917_v24 = vld [vmem:[#allocation5 + $0xa8] sm:$0xff]   ;;  %v918_v25 = vld [vmem:[#allocation5 + $0x70] sm:$0xff]   ;;  %v922_v29 = vld [vmem:[#allocation5 + $0x78] sm:$0xff]  }
  0x31   :  { %819 = vmatprep.subr.bf16.mxu1 %v904_v11  ;;  %v919_v26 = vld [vmem:[#allocation5 + $0x30] sm:$0xff]   ;;  %v923_v30 = vld [vmem:[#allocation5 + $0x38] sm:$0xff]   ;;  %v49_v32 = vld [vmem:[#allocation3] sm:$0xff] }
  0x32   :  { %798 = vmatpush3.bf16.msra.mxu0 %v903_v10  ;;  %v920_v27 = vld [vmem:[#allocation5 + $0xf0] sm:$0xff]   ;;  %v924_v31 = vld [vmem:[#allocation5 + $0xf8] sm:$0xff]   ;;  %v728_v33 = vcombine.low %v49_v32, %v49_v32  ;;  %v729_v34 = vcombine.high %v49_v32, %v49_v32  ;;  %v928_v36 = vld [vmem:[#allocation5 + $0x140] sm:$0xff]  }
  0x33   :  { %799 = vmatprep.subr.bf16.mxu0 %v906_v13  ;;  %v921_v28 = vld [vmem:[#allocation5 + $0xb0] sm:$0xff]   ;;  %v927_v35 = vld [vmem:[#allocation5 + $0xb8] sm:$0xff]   ;;  %v931_v40 = vld [vmem:[#allocation5 + $0x100] sm:$0xff]  }
  0x34   :  { %820 = vmatpush3.bf16.msra.mxu1 %v905_v12  ;;  %v50_v37 = vld [vmem:[#allocation3 + $0x8] sm:$0xff]  ;;  %565 = vmatprep.mubr.bf16.mxu0 %v729_v34  ;;  %v932_v41 = vld [vmem:[#allocation5 + $0x180] sm:$0xff]   ;;  %v939_v49 = vld [vmem:[#allocation5 + $0x158] sm:$0xff]  }
  0x35   :  { %821 = vmatprep.subr.bf16.mxu1 %v908_v15  ;;  %v730_v38 = vcombine.low %v50_v37, %v50_v37  ;;  %v731_v39 = vcombine.high %v50_v37, %v50_v37  ;;  %v933_v42 = vld [vmem:[#allocation5 + $0x148] sm:$0xff]   ;;  %v936_v46 = vld [vmem:[#allocation5 + $0x150] sm:$0xff]   ;;  %v940_v50 = vld [vmem:[#allocation5 + $0x118] sm:$0xff]  }
  0x36   :  { %800 = vmatpush3.bf16.msra.mxu0 %v907_v14  ;;  %v934_v44 = vld [vmem:[#allocation5 + $0x108] sm:$0xff]   ;;  %v937_v47 = vld [vmem:[#allocation5 + $0x110] sm:$0xff]   ;;  %v942_v51 = vld [vmem:[#allocation5 + $0x160] sm:$0xff]  }
  0x37   :  { %801 = vmatprep.subr.bf16.mxu0 %v910_v17  ;;  %605 = vmatprep.mubr.bf16.mxu1 %v731_v39  ;;  %v935_v45 = vld [vmem:[#allocation5 + $0x188] sm:$0xff]   ;;  %v938_v48 = vld [vmem:[#allocation5 + $0x190] sm:$0xff]   ;;  %v941_v52 = vld [vmem:[#allocation5 + $0x198] sm:$0xff]  }
  0x38   :  { %822 = vmatpush3.bf16.msra.mxu1 %v909_v16  ;;  %v943_v53 = vld [vmem:[#allocation5 + $0x120] sm:$0xff]   ;;  %v945_v54 = vld [vmem:[#allocation5 + $0x168] sm:$0xff]   ;;  %v948_v57 = vld [vmem:[#allocation5 + $0x170] sm:$0xff]  }
  0x39   :  { %823 = vmatprep.subr.bf16.mxu1 %v912_v19  ;;  %v944_v55 = vld [vmem:[#allocation5 + $0x1a0] sm:$0xff]   ;;  %v946_v56 = vld [vmem:[#allocation5 + $0x128] sm:$0xff]   ;;  %v51_v59 = vld [vmem:[#allocation3 + $0x10] sm:$0xff] }
  0x3a   :  { %802 = vmatpush3.bf16.msra.mxu0 %v911_v18  ;;  %v947_v58 = vld [vmem:[#allocation5 + $0x1a8] sm:$0xff]   ;;  %v949_v60 = vld [vmem:[#allocation5 + $0x130] sm:$0xff]   ;;  %v733_v61 = vcombine.high %v51_v59, %v51_v59  ;;  %v951_v62 = vld [vmem:[#allocation5 + $0x178] sm:$0xff]   ;;  %v732_v2 = vcombine.low %v51_v59, %v51_v59 }
  0x3b   :  { %803 = vmatprep.subr.bf16.mxu0 %v914_v21  ;;  %v950_v63 = vld [vmem:[#allocation5 + $0x1b0] sm:$0xff]   ;;  %v952_v0 = vld [vmem:[#allocation5 + $0x138] sm:$0xff]   ;;  %v727_v5 = vld [vmem:[%s1090_s2] ss:$0 sm:$0xff] }
  0x3c   :  { %824 = vmatpush3.bf16.msra.mxu1 %v913_v20  ;;  %v955_v1 = vld [vmem:[#allocation5 + $0x1b8] sm:$0xff]   ;;  %v792_v32 = vld [vmem:[#allocation2] ss:$0 sm:$0xff] }
  0x3d   :  { %825 = vmatprep.subr.bf16.mxu1 %v916_v23  ;;  %v956_v3 = vld [vmem:[#allocation3 + $0x18] ss:$0 sps:$4 sm:$0xff]  }
  0x3e   :  { %804 = vmatpush3.bf16.msra.mxu0 %v915_v22 }
  0x3f   :  { %805 = vmatprep.subr.bf16.mxu0 %v918_v25 }
  0x40   :  { %826 = vmatpush3.bf16.msra.mxu1 %v917_v24 }
  0x41   :  { %827 = vmatprep.subr.bf16.mxu1 %v920_v27 }
  0x42   :  { %806 = vmatpush3.bf16.msra.mxu0 %v919_v26 }
  0x43   :  { %807 = vmatprep.subr.bf16.mxu0 %v922_v29  ;;  %v791_v29 = vld [vmem:[%s1091_s3] ss:$0 sm:$0xff] }
  0x44   :  { %828 = vmatpush3.bf16.msra.mxu1 %v921_v28 }
  0x45   :  { %829 = vmatprep.subr.bf16.mxu1 %v924_v31 }
  0x46   :  { %808 = vmatpush3.bf16.msra.mxu0 %v923_v30 }
  0x47   :  { %837 = vmatprep.subr.bf16.mxu0 %v928_v36 }
  0x48   :  { %830 = vmatpush3.bf16.msra.mxu1 %v927_v35 }
  0x49   :  { %566 = vmatmul.mubr.bf16.vlgmr.msra.gmra.mrb[0].mxu0 %v728_v33  ;;  %868 = vmatprep.subr.bf16.mxu1 %v1013_v43 }
  0x4a   :  { %838 = vmatpush3.bf16.msra.mxu0 %v931_v40  ;;  %645 = vmatprep.mubr.bf16.mxu0 %v733_v61 }
  0x4b   :  { %606 = vmatmul.mubr.bf16.vlgmr.msra.gmra.mrb[0].mxu1 %v730_v38  ;;  %839 = vmatprep.subr.bf16.mxu0 %v933_v42 }
  0x4c   :  { %869 = vmatpush3.bf16.msra.mxu1 %v932_v41  ;;  %884 = vmatprep.mubr.msk.bf16.mxu1 %vm1014_vm0, %v1013_v43 }
  0x4d   :  { %870 = vmatprep.subr.bf16.mxu1 %v1013_v43 }
  0x4e   :  { %840 = vmatpush3.bf16.msra.mxu0 %v934_v44 }
  0x4f   :  { %841 = vmatprep.subr.bf16.mxu0 %v936_v46 }
  0x50   :  { %871 = vmatpush3.bf16.msra.mxu1 %v935_v45 }
  0x51   :  { %872 = vmatprep.subr.bf16.mxu1 %v1013_v43 }
  0x52   :  { %842 = vmatpush3.bf16.msra.mxu0 %v937_v47 }
  0x53   :  { %843 = vmatprep.subr.bf16.mxu0 %v939_v49 }
  0x54   :  { %873 = vmatpush3.bf16.msra.mxu1 %v938_v48 }
  0x55   :  { %874 = vmatprep.subr.bf16.mxu1 %v1013_v43 }
  0x56   :  { %844 = vmatpush3.bf16.msra.mxu0 %v940_v50 }
  0x57   :  { %845 = vmatprep.subr.bf16.mxu0 %v942_v51 }
  0x58   :  { %875 = vmatpush3.bf16.msra.mxu1 %v941_v52 }
  0x59   :  { %876 = vmatprep.subr.bf16.mxu1 %v1013_v43 }
  0x5a   :  { %846 = vmatpush3.bf16.msra.mxu0 %v943_v53 }
  0x5b   :  { %847 = vmatprep.subr.bf16.mxu0 %v945_v54 }
  0x5c   :  { %877 = vmatpush3.bf16.msra.mxu1 %v944_v55 }
  0x5d   :  { %878 = vmatprep.subr.bf16.mxu1 %v1013_v43 }
  0x5e   :  { %848 = vmatpush3.bf16.msra.mxu0 %v946_v56 }
  0x5f   :  { %849 = vmatprep.subr.bf16.mxu0 %v948_v57 }
  0x60   :  { %879 = vmatpush3.bf16.msra.mxu1 %v947_v58 }
  0x61   :  { %880 = vmatprep.subr.bf16.mxu1 %v1013_v43 }
  0x62   :  { %850 = vmatpush3.bf16.msra.mxu0 %v949_v60 }
  0x63   :  { %851 = vmatprep.subr.bf16.mxu0 %v951_v62 }
  0x64   :  { %881 = vmatpush3.bf16.msra.mxu1 %v950_v63 }
  0x65   :  { %882 = vmatprep.subr.bf16.mxu1 %v1013_v43 }
  0x66   :  { %852 = vmatpush3.bf16.msra.mxu0 %v952_v0 }
  0x68   :  { %883 = vmatpush3.bf16.msra.mxu1 %v955_v1 }
  0x69   :  { %646 = vmatmul.mubr.bf16.vlgmr.msra.gmra.mrb[4].mxu0 %v732_v2 }
  0x6b   :  { %885 = vmatmul.mubr.bf16.vlgmr.msra.gmra.mrb[4].mxu1 %v956_v3 }
 0x11c   :  { %v809_v4 = vpop.f32.mrb[0].mxu0 }
 0x11d   :  { %v810_v6 = vpop.f32.mrb[1].mxu0 }
 0x11e   :  { %v811_v7 = vadd.f32 %v810_v6, %v809_v4  ;;  %v812_v8 = vpop.f32.mrb[2].mxu0  ;;  %v831_v9 = vpop.f32.mrb[0].mxu1 }
 0x11f   :  { %v813_v10 = vpop.f32.mrb[3].mxu0  ;;  %v832_v11 = vpop.f32.mrb[1].mxu1 }
 0x120   :  { %v568_v12 = vadd.f32 %v811_v7, %v727_v5  ;;  %v833_v13 = vadd.f32 %v832_v11, %v831_v9  ;;  %v834_v14 = vpop.f32.mrb[2].mxu1 }
 0x121   :  { %v835_v15 = vpop.f32.mrb[3].mxu1 }
 0x122   :  { %v608_v16 = vadd.f32 %v833_v13, %v568_v12 }
 0x13c   :  { %v853_v17 = vpop.f32.mrb[4].mxu0 }
 0x13d   :  { %v854_v18 = vpop.f32.mrb[5].mxu0 }
 0x13e   :  { %v855_v19 = vadd.f32 %v854_v18, %v853_v17  ;;  %v856_v20 = vpop.f32.mrb[6].mxu0  ;;  %v687_v21 = vpop.f32.mrb[4].mxu1 }
 0x13f   :  { %v857_v22 = vpop.f32.mrb[7].mxu0  ;;  %v886_v23 = vpop.f32.mrb[5].mxu1 }
 0x140   :  { %v648_v24 = vadd.f32 %v855_v19, %v608_v16  ;;  %v690_v25 = vpop.f32.mrb[6].mxu1 }
 0x141   :  { %v887_v26 = vpop.f32.mrb[7].mxu1 }
 0x142   :  { %v688_v27 = vadd.f32 %v687_v21, %v648_v24 }
 0x144   :  { %v694_v28 = vmul.f32 0.1, %v688_v27  ;;  %vm693_vm1 = vcmp.gt.f32.partialorder %v688_v27, 0.0 }
 0x146   :  { %v695_v30 = vsel %vm693_vm1, %v688_v27, %v694_v28 }
 0x147   :  { %v703_v31 = vmul.f32 %v791_v29, %v695_v30 }
 0x149   :  { %704 = vadd.xlane.f32.xlu0 %v703_v31 }
 0x1d6   :  { %v705_v33 = vpop.xlane.xlu0 %704 }
 0x1d7   :  { %v713_v34 = vadd.f32 %v792_v32, %v705_v33 }
 0x1d9   :  { %v714_v35 = vsub.f32 0.0, %v713_v34 }
 0x1db   :  { %v715_v36 = vmul.f32 1.442695, %v714_v35 }
 0x1dd   :  { %957 = vpow2.f32 %v715_v36 }
 0x1e7   :  { %v958_v37 = vpop.eup %957 }
 0x1e8   :  { %v717_v38 = vadd.f32 1.0, %v958_v37 }
 0x1ea   :  { %959 = vrcp.f32 %v717_v38 }
 0x1f4   :  { %v960_v39 = vpop.eup %959 }
 0x1f5   :  { %720 = vst.msk [vmem:[%s1093_s5] sm:$0xff] %vm719_vm2, %v960_v39 }
 0x1f6   :  { %725 = vsyncpa [#allocation4], 1 }
 0x1f7   :  { %726 = vsyncpa [#allocation6], 1 }

</bundles_post_ra>
